<compile_context>
chip_gen: v6e
topology: v6e:2x2x1
jax: 0.10.0
libtpu: 0.0.40
codegen_flags: <defaults>
</compile_context>

<pallas_src>
import functools

import jax
import jax.numpy as jnp
from jax import lax
from jax.experimental import pallas as pl
from jax.experimental.pallas import tpu as pltpu


def _round_up(x, m):
    return -(-x // m) * m


def _avgpool_kernel(x_ref, o_ref, acc_ref, *, inv_hw, hw, hw_block, need_mask):
    # Grid = (N, C-blocks, HW-blocks); HW (reduction) axis innermost.
    #   x_ref:   (1, Cb, HWb)  input tile, native dtype
    #   o_ref:   (1, Cb, 1)    output tile (resident across the HW axis)
    #   acc_ref: (1, Cb, 128)  lane-dense f32 accumulator scratch
    k = pl.program_id(2)
    ncols = hw_block // 128

    @pl.when(k == 0)
    def _():
        acc_ref[...] = jnp.zeros_like(acc_ref)

    def masked(chunk, lane_start):
        # Zero garbage lanes of a partial / padded last HW block.
        if not need_mask:
            return chunk
        lane = lane_start + lax.broadcasted_iota(jnp.int32, chunk.shape, 2)
        return jnp.where(lane < hw, chunk, jnp.zeros_like(chunk))

    if ncols <= 32:
        # Load the whole tile once; accumulate its 128-wide vreg columns with
        # plain VPU adds (no per-step cross-lane reduce).
        x = masked(x_ref[...], k * hw_block)
        acc = acc_ref[...]
        for q in range(ncols):
            acc = acc + x[:, :, q * 128:(q + 1) * 128].astype(jnp.float32)
        acc_ref[...] = acc
    else:
        # Very wide tiles: stream 128-lane columns out of VMEM.
        def body(q, acc):
            start = pl.multiple_of(q * 128, 128)
            chunk = x_ref[:, :, pl.ds(start, 128)]
            return acc + masked(chunk, k * hw_block + start).astype(jnp.float32)

        acc_ref[...] = lax.fori_loop(0, ncols, body, acc_ref[...], unroll=8)

    @pl.when(k == pl.num_programs(2) - 1)
    def _():
        # One cross-lane (XLU) reduction per (batch, channel-block), then scale.
        total = jnp.sum(acc_ref[...], axis=-1, keepdims=True)
        o_ref[...] = (total * inv_hw).astype(o_ref.dtype)


def _pick_blocks(n, c, hw, itemsize, budget_bytes):
    # Sublane alignment follows dtype packing: 8 (f32), 16 (bf16), 32 (i8/fp8).
    c_align = max(8, 32 // itemsize)
    budget_elems = max(c_align * 128, budget_bytes // itemsize)
    hw_pad = _round_up(hw, 128)

    if c_align * hw_pad <= budget_elems:
        # Whole reduction extent per block (one contiguous row DMA); spend the
        # rest of the budget on channels.
        hw_block = hw_pad
    else:
        # Spatial dim too large: widest 128-aligned block the budget allows at
        # the minimum channel block (row chunks stay multi-KB contiguous).
        hw_block = max(128, (budget_elems // c_align // 128) * 128)

    if c <= c_align:
        c_block = c  # full (tiny) channel dim — always a legal block extent
    else:
        c_cap = max(c_align, budget_elems // hw_block)
        c_block = max(c_align, (c_cap // c_align) * c_align)
        c_block = min(c_block, _round_up(c, c_align))
        # v7x has two TensorCores sharing HBM: make sure the parallel part of
        # the grid has >= 2 blocks to shard (no-op on single-TC v5e/v6e).
        if n * pl.cdiv(c, c_block) < 2:
            half = _round_up(pl.cdiv(c, 2), c_align)
            if half < c:
                c_block = half
    return c_block, hw_block


def avg_pool_neck(xs, *, c_block=None, hw_block=None,
                  tile_budget_bytes=8 * 1024 * 1024):
    """Mirrors AvgPoolNeck.forward: [x NCHW] -> [(N, C, 1, 1) mean over H, W]."""
    assert len(xs) == 1
    x = xs[0]
    assert x.ndim == 4, x.shape
    assert jnp.issubdtype(x.dtype, jnp.floating), "float dtypes only"
    n, c, h, w = x.shape
    hw = h * w
    itemsize = jnp.dtype(x.dtype).itemsize

    # Free reshape only — no transpose, no extra HBM round-trip.
    x3 = x.reshape(n, c, hw)  # (N, C, HW)

    auto_c, auto_hw = _pick_blocks(n, c, hw, itemsize, tile_budget_bytes)
    if c_block is None:
        c_block = auto_c
    if hw_block is None:
        hw_block = auto_hw
    else:
        hw_block = _round_up(hw_block, 128)  # kernel needs 128-aligned columns

    grid = (n, pl.cdiv(c, c_block), pl.cdiv(hw, hw_block))
    need_mask = (hw % hw_block) != 0

    kernel = functools.partial(_avgpool_kernel, inv_hw=1.0 / hw, hw=hw,
                               hw_block=hw_block, need_mask=need_mask)

    tile_bytes = c_block * hw_block * itemsize
    # 2x double-buffered input tile + accumulator + headroom; at least 32 MiB
    # (v5e scoped default is 16 MiB), capped safely below v7x's 64 MiB VMEM.
    vmem_limit = int(min(48 * 1024 * 1024,
                         max(32 * 1024 * 1024,
                             2 * tile_bytes + c_block * 512 + (4 << 20))))

    cost = pl.CostEstimate(
        flops=n * c * hw,
        transcendentals=0,
        bytes_accessed=n * c * hw * itemsize + n * c * itemsize,
    )

    out = pl.pallas_call(
        kernel,
        out_shape=jax.ShapeDtypeStruct((n, c, 1), x.dtype),
        grid_spec=pltpu.PrefetchScalarGridSpec(
            num_scalar_prefetch=0,
            grid=grid,
            in_specs=[pl.BlockSpec((1, c_block, hw_block),
                                   lambda b, ci, ki: (b, ci, ki))],
            out_specs=pl.BlockSpec((1, c_block, 1),
                                   lambda b, ci, ki: (b, ci, 0)),
            scratch_shapes=[pltpu.VMEM((1, c_block, 128), jnp.float32)],
        ),
        compiler_params=pltpu.CompilerParams(
            dimension_semantics=("parallel", "parallel", "arbitrary"),
            vmem_limit_bytes=vmem_limit),
        cost_estimate=cost,
    )(x3)  # (N, C, 1)

    # Back to the PyTorch output convention (N, C, 1, 1) — free reshape.
    return [out.reshape(n, c, 1, 1)]


if __name__ == "__main__":
    key = jax.random.PRNGKey(0)
    k1, k2, k3 = jax.random.split(key, 3)

    # Small NCHW input consistent with the module.
    x = jax.random.normal(k1, (2, 4, 16, 16), dtype=jnp.float32)
    ref = jnp.mean(x, axis=(2, 3), keepdims=True)

    (y,) = avg_pool_neck([x])
    y = jax.block_until_ready(y)
    assert y.shape == (2, 4, 1, 1), y.shape
    assert jnp.allclose(y, ref, atol=1e-5, rtol=1e-5)

    # Force a tiled H*W reduction (2 grid steps) to exercise the accumulator.
    (y2,) = avg_pool_neck([x], hw_block=128)
    y2 = jax.block_until_ready(y2)
    assert jnp.allclose(y2, ref, atol=1e-5, rtol=1e-5)

    # Non-128-divisible spatial extent (7x7 -> masked partial block).
    x2 = jax.random.normal(k2, (1, 8, 7, 7), dtype=jnp.float32)
    ref2 = jnp.mean(x2, axis=(2, 3), keepdims=True)
    (y3,) = avg_pool_neck([x2])
    y3 = jax.block_until_ready(y3)
    assert jnp.allclose(y3, ref2, atol=1e-5, rtol=1e-5)

    # bf16 input: dtype-aware sublane alignment + f32 accumulation.
    xb = jax.random.normal(k3, (2, 16, 16, 16), dtype=jnp.bfloat16)
    refb = jnp.mean(xb.astype(jnp.float32), axis=(2, 3), keepdims=True)
    (yb,) = avg_pool_neck([xb])
    yb = jax.block_until_ready(yb)
    assert yb.dtype == jnp.bfloat16
    assert jnp.allclose(yb.astype(jnp.float32), refb, atol=1e-2, rtol=1e-2)

    print("KERNEL_OK")
</pallas_src>

<mosaic_0001>
module attributes {stable_mosaic.version = 11 : i64} {
  func.func @_avgpool_kernel(%arg0: i32, %arg1: i32, %arg2: i32, %arg3: memref<1x4x256xf32, #tpu.memory_space<vmem>>, %arg4: memref<1x4x1xf32, #tpu.memory_space<vmem>>, %arg5: memref<1x4x128xf32, #tpu.memory_space<vmem>>) attributes {dimension_semantics = [#tpu.dimension_semantics<parallel>, #tpu.dimension_semantics<parallel>, #tpu.dimension_semantics<arbitrary>], iteration_bounds = array<i64: 2, 1, 1>, scalar_prefetch = 0 : i64, scratch_operands = 1 : i64, tpu.core_type = #tpu.core_type<tc>, window_params = [{transform_indices = @transform_0, window_bounds = array<i64: 1, 4, 256>}, {transform_indices = @transform_1, window_bounds = array<i64: 1, 4, 1>}]} {
    %c0_i32 = arith.constant 0 : i32
    %0 = arith.cmpi eq, %arg2, %c0_i32 : i32
    %1 = arith.extui %0 : i1 to i32
    %c0_i32_0 = arith.constant 0 : i32
    %2 = arith.cmpi ne, %1, %c0_i32_0 : i32
    scf.if %2 {
      %cst = arith.constant 0.000000e+00 : f32
      %13 = vector.broadcast %cst : f32 to vector<1x4x128xf32>
      %c0_11 = arith.constant 0 : index
      %c0_12 = arith.constant 0 : index
      %c0_13 = arith.constant 0 : index
      %14 = vector.load %arg5[%c0_11, %c0_12, %c0_13] : memref<1x4x128xf32, #tpu.memory_space<vmem>>, vector<1x4x128xf32>
      tpu.vector_store %arg5[%c0_11, %c0_12, %c0_13], %13 {strides = array<i32>} : memref<1x4x128xf32, #tpu.memory_space<vmem>>, vector<1x4x128xf32>,
    } else {
    }
    %c0 = arith.constant 0 : index
    %c0_1 = arith.constant 0 : index
    %c0_2 = arith.constant 0 : index
    %3 = vector.load %arg3[%c0, %c0_1, %c0_2] : memref<1x4x256xf32, #tpu.memory_space<vmem>>, vector<1x4x256xf32>
    %c0_3 = arith.constant 0 : index
    %c0_4 = arith.constant 0 : index
    %c0_5 = arith.constant 0 : index
    %4 = vector.load %arg5[%c0_3, %c0_4, %c0_5] : memref<1x4x128xf32, #tpu.memory_space<vmem>>, vector<1x4x128xf32>
    %5 = vector.extract_strided_slice %3 {offsets = [0, 0, 0], sizes = [1, 4, 128], strides = [1, 1, 1]} : vector<1x4x256xf32> to vector<1x4x128xf32>
    %6 = arith.addf %4, %5 : vector<1x4x128xf32>
    %7 = vector.extract_strided_slice %3 {offsets = [0, 0, 128], sizes = [1, 4, 128], strides = [1, 1, 1]} : vector<1x4x256xf32> to vector<1x4x128xf32>
    %8 = arith.addf %6, %7 : vector<1x4x128xf32>
    %c0_6 = arith.constant 0 : index
    %c0_7 = arith.constant 0 : index
    %c0_8 = arith.constant 0 : index
    %9 = vector.load %arg5[%c0_6, %c0_7, %c0_8] : memref<1x4x128xf32, #tpu.memory_space<vmem>>, vector<1x4x128xf32>
    tpu.vector_store %arg5[%c0_6, %c0_7, %c0_8], %8 {strides = array<i32>} : memref<1x4x128xf32, #tpu.memory_space<vmem>>, vector<1x4x128xf32>,
    %c0_i32_9 = arith.constant 0 : i32
    %10 = arith.cmpi eq, %arg2, %c0_i32_9 : i32
    %11 = arith.extui %10 : i1 to i32
    %c0_i32_10 = arith.constant 0 : i32
    %12 = arith.cmpi ne, %11, %c0_i32_10 : i32
    scf.if %12 {
      %c0_11 = arith.constant 0 : index
      %c0_12 = arith.constant 0 : index
      %c0_13 = arith.constant 0 : index
      %13 = vector.load %arg5[%c0_11, %c0_12, %c0_13] : memref<1x4x128xf32, #tpu.memory_space<vmem>>, vector<1x4x128xf32>
      %cst = arith.constant dense<0.000000e+00> : vector<1x4xf32>
      %14 = vector.multi_reduction <add>, %13, %cst [2] : vector<1x4x128xf32> to vector<1x4xf32>
      %15 = vector.shape_cast %14 : vector<1x4xf32> to vector<1x4x1xf32>
      %cst_14 = arith.constant 3.906250e-03 : f32
      %16 = vector.broadcast %cst_14 : f32 to vector<1x4x1xf32>
      %17 = arith.mulf %15, %16 : vector<1x4x1xf32>
      %c0_15 = arith.constant 0 : index
      %c0_16 = arith.constant 0 : index
      %c0_17 = arith.constant 0 : index
      %18 = vector.load %arg4[%c0_15, %c0_16, %c0_17] : memref<1x4x1xf32, #tpu.memory_space<vmem>>, vector<1x4x1xf32>
      tpu.vector_store %arg4[%c0_15, %c0_16, %c0_17], %17 {strides = array<i32>} : memref<1x4x1xf32, #tpu.memory_space<vmem>>, vector<1x4x1xf32>,
    } else {
    }
    return
  }
  func.func @transform_0(%arg0: i32, %arg1: i32, %arg2: i32) -> (i32, i32, i32) {
    %c0_i32 = arith.constant 0 : i32
    return %arg0, %arg1, %arg2 : i32, i32, i32
  }
  func.func @transform_1(%arg0: i32, %arg1: i32, %arg2: i32) -> (i32, i32, i32) {
    %c0_i32 = arith.constant 0 : i32
    %c0_i32_0 = arith.constant 0 : i32
    return %arg0, %arg1, %c0_i32 : i32, i32, i32
  }
}

</mosaic_0001>

<bundles_post_ra>
// kernel: tpu_custom_call.1
= control target key start
LH: loop header
LB: loop body
LE: loop exit
PB: predicated region body
PF: predicated region fallthrough
CT: control target
= control target key end

     0   :  { %6 = vsyncpa [#allocation4], 0  ;;  %s546_s0 = inlined_call_operand.hbm [shape: f32[2,4,256], index: 0, kind: input, shape index: {}]   ;;  %s547_s1 = inlined_call_operand.vmem [shape: f32[2,4,1], index: 1, kind: output, shape index: {}]  }
   0x1   :  { %8 = vsyncpa [#allocation4 + $0x1], 0  ;;  %s446_s6 = smov 0   ;;  %s448_s7 = smov 0  }
   0x2   :  { %s450_s8 = smov 0   ;;  %s452_s9 = smov 0  }
   0x3   :  { %s454_s10 = smov 0   ;;  %s456_s11 = smov 0  }
   0x4 LB: > { %s284_s12 = sadd.s32 4294967295, %s432_s11   ;;  %s33_s13 = sadd.s32 1, %s428_s10  ;;  %s432_s11 = sphi %s456_s11, %s14_s11   ;;  %s428_s10 = sphi %s454_s10, %s555_s10   ;;  %s424_s9 = sphi %s452_s9, %s554_s9   ;;  %s420_s8 = sphi %s450_s8, %s553_s8   ;;  %s416_s7 = sphi %s448_s7, %s552_s7   ;;  %s412_s6 = sphi %s446_s6, %s551_s6  }
   0x5   : > { %p35_p0 = scmp.ge.s32.totalorder %s33_s13, 2  ;;  %s44_s14 = sadd.s32 1, %s420_s8 }
   0x6   : > { %p51_p1 = scmp.ne.s32.totalorder %s420_s8, %s416_s7  ;;  %p52_p2 = scmp.eq.s32.totalorder %s432_s11, 0 }
   0x7   : > { %s557_s13 = smov (%p35_p0, %s33_s13), 0  ;;  %p57_p4 = scmp.ne.s32.totalorder %s416_s7, %s412_s6 }
   0x8   : > { %p482_p3 = por %p52_p2, %p51_p1  ;;  %s37_s16 = ssub.s32 %s428_s10, %s557_s13 }
   0x9   : > { %p58_p5 = scmp.eq.s32.totalorder %s284_s12, 0  ;;  %p42_p6 = scmp.eq.s32.totalorder %s37_s16, 0 }
   0xa   : > { %p303_p8 = scmp.lt.s32.totalorder %s432_s11, 2  ;;  %s109_s19 = sand.u32 1, %s420_s8  }
   0xb   : > { %p489_p7 = por %p58_p5, %p57_p4  ;;  %s296_s20 = sshll.u32 %s428_s10, 7 }
   0xc   : > { %s495_s18 = scalar_select %p42_p6, %s420_s8, %s44_s14  }
   0xd   : > { %s288_s21 = sshll.u32 %s109_s19, 3  ;;  %s123_s24 = scalar_lea.hbm %s546_s0, %s296_s20 }
   0xe   : > { %s113_s25 = scalar_lea.vmem [#allocation3], %s288_s21  ;;  %p504_p9 = pnand %p303_p8, %p482_p3 }
   0xf   : > { %s125_s26 = sshll.u32 %s113_s25, 4  ;;  %p291_p10 = scmp.ge.s32.totalorder %s432_s11, 1  ;;  %s126_s26 = int_to_ptr.vmem [resolvable:$true] %s125_s26 }
  0x10   : > { %p130_p11 = scmp.lt.s32.totalorder %s432_s11, 3  ;;  %s110_s28 = scalar_lea.sflag [#allocation4], %s109_s19 }
  0x11   : > { %p356_p12 = pneg %p504_p9  ;;  %s367_s29 = scalar_lea.vmem %s126_s26, 128 }
  0x12   : > { %p368_p13 = scmp.ne.s32.totalorder %s126_s26, %s367_s29  ;;  %s434_s30 = smov [#allocation3]  }
  0x13   : > { %s372_s2 = sshll.u32 %s434_s30, 4  ;;  %s373_s2 = int_to_ptr.vmem [resolvable:$false] %s372_s2 }
  0x14   : > { %p370_p0 = pnand %p368_p13, %p356_p12  ;;  %s374_s3 = scalar_lea.vmem %s373_s2, 256 }
  0x15   : > { %p375_p2 = scmp.lt.s32.totalorder %s126_s26, %s373_s2  ;;  %p376_p3 = scmp.lt.s32.totalorder %s374_s3, %s367_s29 }
  0x16   : > { %p371_p1 = pneg %p370_p0 }
  0x17   : > { %p377_p4 = por %p376_p3, %p375_p2 }
  0x19   : > { %p378_p5 = pnand %p377_p4, %p371_p1 }
  0x1b   : > { %381 = shalt.err (!%p378_p5)
}
  0x1c   : > { %302 = dma.hbm_to_vmem [thread:$0]  (!%p504_p9), %s123_s24, 128, %s126_s26, %s110_s28  }
  0x1d   : > { %p131_p6 = pnand %p291_p10, %p130_p11 }
  0x1e   : > { %s136_s4 = sand.u32 (!%p131_p6), 1, %s416_s7  }
  0x1f   : > { %134 = sbr.rel (%p131_p6) target bundleno = 200 (0xc8), region = 24  ;;  %s292_s5 = sshll.u32 (!%p131_p6), %s136_s4, 3 }
  0x20   : > { %s137_s6 = scalar_lea.sflag (!%p131_p6), [#allocation4], %s136_s4  ;;  %s140_s12 = scalar_lea.vmem (!%p131_p6), [#allocation3], %s292_s5 }
  0x24   : > { %407 = dma.done.wait (%p489_p7), %s137_s6, 128  }
  0x25   : > { %409 = vsyncadd (%p489_p7), %s137_s6, 4294967168  ;;  %v435_v0 = vmov 0.0   ;;  %v174_v1 = vld [vmem:[%s140_s12] sm:$0xff]  ;;  %vm186_vm0 = vcmask 1043456   ;;  %p162_p8 = scmp.lt.s32.totalorder %s424_s9, 1  ;;  %vm191_vm1 = vcmask 3072  }
  0x26   : > { %173 = vst [vmem:[#allocation2] sm:$0xf] %v435_v0  ;;  %v178_v3 = vcombine.high %v174_v1, %v174_v1 }
  0x27   : > { %s559_s9 = smov (!%p162_p8, %s424_s9), 1 }
  0x28   : > { %s293_s14 = sshll.u32 %s559_s9, 2 }
  0x29   : > { %s168_s17 = scalar_lea.vmem %s547_s1, %s293_s14 }
  0x2d   : > { %v175_v2 = vld [vmem:[#allocation2] sm:$0xf] }
  0x2e   : > { %v176_v4 = vadd.f32 %v175_v2, %v174_v1 }
  0x30   : > { %v180_v5 = vadd.f32 %v178_v3, %v176_v4 }
  0x32   : > { %181 = vst [vmem:[#allocation2] sm:$0xf] %v180_v5 }
  0x39   : > { %v185_v6 = vld [vmem:[#allocation2] sm:$0xf] }
  0x3a   : > { %v187_v7 = vsel %vm186_vm0, %v185_v6, 0.0 }
  0x3b   : > { %188 = vadd.xlane.f32.xlu0 %v187_v7 }
  0xc4   : > { %v189_v8 = vpop.xlane.xlu0 %188 }
  0xc5   : > { %v190_v9 = vmul.f32 0.00390625, %v189_v8 }
  0xc7   : > { %192 = vst.msk [vmem:[%s168_s17] sm:$0xf] %vm191_vm1, %v190_v9 }
  0xc8 PF: > { %s14_s11 = sadd.s32 1, %s432_s11   ;;  %s551_s6 = smov %s416_s7 }
  0xc9   : > { %p11_p7 = scmp.ge.s32.totalorder %s14_s11, 4   ;;  %s552_s7 = smov %s420_s8 }
  0xca   : > { %s553_s8 = smov %s495_s18  ;;  %s554_s9 = smov %s428_s10 }
  0xcb   : > { %s555_s10 = smov %s557_s13  ;;  %13 = sbr.rel (!%p11_p7) target bundleno = 4 (0x4), region = 72 }
  0xd0   :  { %218 = vsyncpa [#allocation4], 1 }
  0xd1   :  { %220 = vsyncpa [#allocation4 + $0x1], 1 }

</bundles_post_ra>
